<compile_context>
chip_gen: v5e
topology: v5e:2x2
jax: 0.10.0
libtpu: 0.0.40
codegen_flags: <defaults>
</compile_context>

<pallas_src>
import numpy as np
import jax
import jax.numpy as jnp
from jax import lax
from jax.experimental import pallas as pl
from jax.experimental.pallas import tpu as pltpu


def _round_up(v, m):
    return ((v + m - 1) // m) * m


def _cdiv(a, b):
    return (a + b - 1) // b


_VMEM_BUDGET = 40 * 1024 * 1024   # target for the tile-size estimate
_VMEM_LIMIT = 48 * 1024 * 1024    # scoped VMEM limit (safe on v5e/v6e/v7x)


# ----------------------------------------------------------------------------
# Pallas kernels
# ----------------------------------------------------------------------------
def _conv_matmul_kernel(p_ref, w_ref, b_ref, o_ref, acc_ref):
    """im2col matmul writing the output directly in channel-major layout.

    p_ref : (tm, tk) bf16  im2col patch rows for one (batch, spatial tile)
    w_ref : (tn, tk) bf16  weight rows (Cout-major), contracted on K
    b_ref : (tn, 1)  f32   bias column
    o_ref : (tn, tm)       output tile (Cout-major -> no epilogue transpose)
    acc   : (tn, tm) f32   K-axis accumulator
    """
    k = pl.program_id(3)

    @pl.when(k == 0)
    def _():
        acc_ref[...] = jnp.zeros_like(acc_ref)

    # (tn, tk) x (tm, tk) contracted on the last dims -> (tn, tm); bf16
    # operands with f32 accumulation on the MXU (RHS-transposed form).
    acc_ref[...] += lax.dot_general(
        w_ref[...], p_ref[...],
        dimension_numbers=(((1,), (1,)), ((), ())),
        preferred_element_type=jnp.float32)

    @pl.when(k == pl.num_programs(3) - 1)
    def _():
        o_ref[...] = (acc_ref[...] + b_ref[...]).astype(o_ref.dtype)


def _avgpool_kernel(x_ref, p_ref, o_ref):
    """2x2x2 mean pooling.

    x_ref: (tr, 2, th*4*Wo)  rows=(n,c,do); dim 1 = depth pair; the minor dim
                             packs (local ho, h-pair, w) and is lane-dense.
    p_ref: (th*4*Wo, tWp)    small constant averaging matrix (1/8), with zero
                             columns padding the output block to 128 lanes.
    o_ref: (tr, tWp)
    """
    v = x_ref[:, 0, :].astype(jnp.float32) + x_ref[:, 1, :].astype(jnp.float32)
    o_ref[...] = jnp.dot(v, p_ref[...],
                         preferred_element_type=jnp.float32).astype(o_ref.dtype)


# ----------------------------------------------------------------------------
# Conv path (with_conv=True)
# ----------------------------------------------------------------------------
@jax.jit
def _conv_downsample(x, weight, bias):
    """Conv3d(C, Cout, kernel=3, stride=2, padding=0) after (0,1) right pad."""
    N, C, D, H, W = x.shape
    Cout = weight.shape[0]
    Do = (D + 1 - 3) // 2 + 1
    Ho = (H + 1 - 3) // 2 + 1
    Wo = (W + 1 - 3) // 2 + 1
    S = Do * Ho * Wo
    K = 27 * C

    # One pass over the input: bf16 (MXU-native), channels-last, right pad.
    xcl = jnp.transpose(x.astype(jnp.bfloat16), (0, 2, 3, 4, 1))
    xcl = jnp.pad(xcl, ((0, 0), (0, 1), (0, 1), (0, 1), (0, 0)))

    # im2col in (kd, kh, kw, cin) K-order: with channels-last input the taps
    # stack directly into the final (N, S, K) layout — no big transpose and no
    # separate pad copy of the patches tensor.
    # TODO(synk): gather the 27 taps inside the kernel (manual DMA of strided
    # windows of the padded input kept in HBM) so the (N, S, K) patches tensor
    # is never materialised in HBM at all.
    taps = [xcl[:, kd:kd + 2 * Do:2, kh:kh + 2 * Ho:2, kw:kw + 2 * Wo:2, :]
            for kd in range(3) for kh in range(3) for kw in range(3)]
    patches = jnp.stack(taps, axis=4).reshape(N, S, K)

    # Weight (Cout, Cin, 3, 3, 3) -> (Cout, K), same (kd, kh, kw, cin) order,
    # kept Cout-major so the kernel writes channel-major output directly.
    w_mat = jnp.transpose(weight, (0, 2, 3, 4, 1)).reshape(Cout, K)
    w_mat = w_mat.astype(jnp.bfloat16)

    # ---- tile selection ----------------------------------------------------
    Coutp = _round_up(Cout, 128)
    if Coutp <= 512:
        tn = Coutp                      # single Cout block -> patches stream once
    elif Coutp % 256 == 0:
        tn = 256
    else:
        tn = 128

    out_isz = jnp.dtype(x.dtype).itemsize

    def vmem_est(tm_, tk_):
        return (2 * tm_ * tk_ * 2 + 2 * tn * tk_ * 2
                + 2 * tn * tm_ * out_isz + tn * tm_ * 4 + 2 * tn * 4)

    if S % 128 == 0:
        tm_opts = [c for c in (1024, 896, 768, 640, 512, 384, 256, 128)
                   if S % c == 0]
    elif S <= 2048:
        tm_opts = [S]                   # full-spatial block (exempt from 128 rule)
    else:
        tm_opts = [512, 384, 256, 128]  # 128-multiples; edge blocks are masked

    tk = None
    for tm in tm_opts:                  # prefer a single K step: weight slab stays
        if vmem_est(tm, K) <= _VMEM_BUDGET:   # VMEM-resident, no K padding needed
            tk, Kp = K, K
            break
    if tk is None:                      # very large C: tile K (rare path)
        tm = tm_opts[-1]
        tk = next(t for t in (2048, 1024, 512, 256, 128)
                  if vmem_est(tm, t) <= _VMEM_BUDGET)
        Kp = _round_up(K, tk)

    gi = _cdiv(S, tm)
    gj = Coutp // tn
    if N * gi * gj < 2 and tm % 256 == 0:   # keep both v7x TensorCores busy
        tm //= 2
        gi = _cdiv(S, tm)

    if Kp != K:
        # K tiling needs zero padding so the accumulation never reads
        # out-of-bounds data (only hit for very large channel counts).
        patches = jnp.pad(patches, ((0, 0), (0, 0), (0, Kp - K)))
    w_p = jnp.pad(w_mat, ((0, Coutp - Cout), (0, Kp - K)))
    b_p = jnp.pad(bias.astype(jnp.float32).reshape(Cout, 1),
                  ((0, Coutp - Cout), (0, 0)))

    out = pl.pallas_call(
        _conv_matmul_kernel,
        out_shape=jax.ShapeDtypeStruct((N, Coutp, S), x.dtype),
        grid=(N, gi, gj, Kp // tk),
        in_specs=[
            pl.BlockSpec((None, tm, tk), lambda n, i, j, k: (n, i, k)),
            pl.BlockSpec((tn, tk), lambda n, i, j, k: (j, k)),
            pl.BlockSpec((tn, 1), lambda n, i, j, k: (j, 0)),
        ],
        out_specs=pl.BlockSpec((None, tn, tm), lambda n, i, j, k: (n, j, i)),
        scratch_shapes=[pltpu.VMEM((tn, tm), jnp.float32)],
        compiler_params=pltpu.CompilerParams(
            dimension_semantics=("parallel", "parallel", "parallel",
                                 "arbitrary"),
            vmem_limit_bytes=_VMEM_LIMIT,
        ),
    )(patches, w_p, b_p)

    if Coutp != Cout:
        out = out[:, :Cout, :]
    return out.reshape(N, Cout, Do, Ho, Wo)     # free reshape, already C-major


# ----------------------------------------------------------------------------
# Avg-pool path (with_conv=False)
# ----------------------------------------------------------------------------
def _pick_h_tile(Ho, Wo):
    """Output-H rows per kernel step (None => XLA fallback for odd shapes).

    Legality: the input block minor (4*th*Wo) must be a 128 multiple unless
    th == Ho (full minor dim).  Prefer the smallest lane-dense tile (keeps the
    constant averaging matrix tiny); hard cap th*Wo <= 768 so the matrix stays
    well under 10 MiB on every generation (v7x VMEM is only 64 MiB).
    """
    best = None
    for th in range(1, Ho + 1):
        if Ho % th or th * Wo > 768:
            continue
        if (th * Wo) % 128 == 0:
            return th                       # smallest lane-dense tile
        if th == Ho or (th * Wo) % 32 == 0:
            best = th                       # largest legal fallback
    return best


@jax.jit
def _avgpool_downsample(x):
    """avg_pool3d(kernel=2, stride=2); odd trailing dims are floored
    (matches the PyTorch avg_pool3d default, ceil_mode=False)."""
    N, C, D, H, W = x.shape
    Do, Ho, Wo = D // 2, H // 2, W // 2
    W2 = 2 * Wo
    Wi = 2 * W2                                   # packed (h-pair, w) length per ho
    xe = x[:, :, :2 * Do, :2 * Ho, :W2]

    th = _pick_h_tile(Ho, Wo)
    if th is None:
        # TODO(synk): pathological (large, odd Ho*Wo) shapes fall back to XLA.
        return xe.reshape(N, C, Do, 2, Ho, 2, Wo, 2).mean(axis=(3, 5, 7))

    R = N * C * Do
    # Free (row-major) reshape: rows=(n,c,do), dim 1 = depth pair, minor packs
    # (ho, h-pair, w).  No host-side transpose / extra HBM pass.
    xr = xe.reshape(R, 2, Ho * Wi)

    nh = Ho // th
    tWo = th * Wo
    tWp = _round_up(tWo, 128)          # lane-dense (unmasked) output block width
    blk_minor = th * Wi

    # Row tile sized against the real padded-layout footprint of the x block
    # ((2 -> 8 sublanes) x 128-lane padding), ~12 MiB per pipeline buffer.
    row_bytes = 8 * _round_up(blk_minor, 128) * 4
    tr = (12 * 1024 * 1024) // row_bytes
    tr = max(8, min(512, (tr // 8) * 8))
    tr = min(tr, _round_up(R, 8))
    if _cdiv(R, tr) * nh < 2 and tr >= 16:        # keep both v7x cores busy
        tr = max(8, ((tr // 2) // 8) * 8)

    # Constant averaging matrix: folds the H-pair + W-pair sums and the 1/8
    # into one small matmul (block-diagonal over the th local output rows;
    # zero columns pad the output block to tWp lanes).
    base = np.zeros((blk_minor, tWp), np.float32)
    for lho in range(th):
        for ph in range(2):
            for w in range(W2):
                base[lho * Wi + ph * W2 + w, lho * Wo + w // 2] = 0.125
    p_blk = jnp.asarray(base)

    out = pl.pallas_call(
        _avgpool_kernel,
        out_shape=jax.ShapeDtypeStruct((R, nh * tWp), x.dtype),
        grid=(_cdiv(R, tr), nh),
        in_specs=[
            pl.BlockSpec((tr, 2, blk_minor), lambda i, h: (i, 0, h)),
            pl.BlockSpec((blk_minor, tWp), lambda i, h: (0, 0)),
        ],
        out_specs=pl.BlockSpec((tr, tWp), lambda i, h: (i, h)),
        compiler_params=pltpu.CompilerParams(
            dimension_semantics=("parallel", "parallel"),
            vmem_limit_bytes=_VMEM_LIMIT,
        ),
    )(xr, p_blk)

    if tWp != tWo:
        out = out.reshape(R, nh, tWp)[:, :, :tWo]
    return out.reshape(N, C, Do, Ho, Wo)


# ----------------------------------------------------------------------------
def downsample(x, params, with_conv):
    if with_conv:
        return _conv_downsample(x, params["weight"], params["bias"])
    return _avgpool_downsample(x)


# ----------------------------------------------------------------------------
# Reference implementations (pure JAX) for verification
# ----------------------------------------------------------------------------
def _conv_ref(x, weight, bias):
    y = lax.conv_general_dilated(
        x, weight, window_strides=(2, 2, 2),
        padding=[(0, 1), (0, 1), (0, 1)],
        dimension_numbers=("NCDHW", "OIDHW", "NCDHW"))
    return y + bias[None, :, None, None, None]


def _avgpool_ref(x):
    N, C, D, H, W = x.shape
    return x.reshape(N, C, D // 2, 2, H // 2, 2, W // 2, 2).mean(axis=(3, 5, 7))


# ----------------------------------------------------------------------------
if __name__ == "__main__":
    key = jax.random.PRNGKey(0)
    k_x, k_w, k_b = jax.random.split(key, 3)

    N, C, D, H, W = 2, 4, 8, 8, 8
    x = jax.random.normal(k_x, (N, C, D, H, W), dtype=jnp.float32)

    # Deterministic Conv3d(in=C, out=C, kernel=3) parameters.
    weight = jax.random.normal(k_w, (C, C, 3, 3, 3), dtype=jnp.float32) * 0.1
    bias = jax.random.normal(k_b, (C,), dtype=jnp.float32) * 0.1
    params = {"weight": weight, "bias": bias}

    # with_conv = True path (Conv3d, stride 2, asymmetric pad).
    # Tolerance reflects bf16 MXU operands (f32 accumulation inside kernel).
    y_conv = jax.block_until_ready(downsample(x, params, with_conv=True))
    y_conv_ref = _conv_ref(x, weight, bias)
    assert y_conv.shape == (N, C, D // 2, H // 2, W // 2), y_conv.shape
    np.testing.assert_allclose(np.asarray(y_conv), np.asarray(y_conv_ref),
                               rtol=2e-2, atol=2e-2)

    # with_conv = False path (avg_pool3d, kernel 2, stride 2), f32 throughout.
    y_pool = jax.block_until_ready(downsample(x, params, with_conv=False))
    y_pool_ref = _avgpool_ref(x)
    assert y_pool.shape == (N, C, D // 2, H // 2, W // 2), y_pool.shape
    np.testing.assert_allclose(np.asarray(y_pool), np.asarray(y_pool_ref),
                               rtol=1e-4, atol=1e-5)

    print("KERNEL_OK")
</pallas_src>

<mosaic_0001>
module attributes {stable_mosaic.version = 11 : i64} {
  func.func @_conv_matmul_kernel(%arg0: i32, %arg1: i32, %arg2: i32, %arg3: i32, %arg4: memref<1x64x108xbf16, #tpu.memory_space<vmem>>, %arg5: memref<128x108xbf16, #tpu.memory_space<vmem>>, %arg6: memref<128x1xf32, #tpu.memory_space<vmem>>, %arg7: memref<1x128x64xf32, #tpu.memory_space<vmem>>, %arg8: memref<128x64xf32, #tpu.memory_space<vmem>>) attributes {dimension_semantics = [#tpu.dimension_semantics<parallel>, #tpu.dimension_semantics<parallel>, #tpu.dimension_semantics<parallel>, #tpu.dimension_semantics<arbitrary>], iteration_bounds = array<i64: 2, 1, 1, 1>, scalar_prefetch = 0 : i64, scratch_operands = 1 : i64, tpu.core_type = #tpu.core_type<tc>, window_params = [{transform_indices = @transform_0, window_bounds = array<i64: 1, 64, 108>}, {transform_indices = @transform_1, window_bounds = array<i64: 128, 108>}, {transform_indices = @transform_2, window_bounds = array<i64: 128, 1>}, {transform_indices = @transform_3, window_bounds = array<i64: 1, 128, 64>}]} {
    %c0_i32 = arith.constant 0 : i32
    %0 = arith.cmpi eq, %arg3, %c0_i32 : i32
    %1 = arith.extui %0 : i1 to i32
    %c0_i32_0 = arith.constant 0 : i32
    %2 = arith.cmpi ne, %1, %c0_i32_0 : i32
    scf.if %2 {
      %cst_11 = arith.constant 0.000000e+00 : f32
      %13 = vector.broadcast %cst_11 : f32 to vector<128x64xf32>
      %c0_12 = arith.constant 0 : index
      %c0_13 = arith.constant 0 : index
      %14 = vector.load %arg8[%c0_12, %c0_13] : memref<128x64xf32, #tpu.memory_space<vmem>>, vector<128x64xf32>
      tpu.vector_store %arg8[%c0_12, %c0_13], %13 {strides = array<i32>} : memref<128x64xf32, #tpu.memory_space<vmem>>, vector<128x64xf32>,
    } else {
    }
    %c0 = arith.constant 0 : index
    %c0_1 = arith.constant 0 : index
    %3 = vector.load %arg8[%c0, %c0_1] : memref<128x64xf32, #tpu.memory_space<vmem>>, vector<128x64xf32>
    %c0_2 = arith.constant 0 : index
    %c0_3 = arith.constant 0 : index
    %4 = vector.load %arg5[%c0_2, %c0_3] : memref<128x108xbf16, #tpu.memory_space<vmem>>, vector<128x108xbf16>
    %c0_4 = arith.constant 0 : index
    %c0_5 = arith.constant 0 : index
    %c0_6 = arith.constant 0 : index
    %5 = vector.load %arg4[%c0_4, %c0_5, %c0_6] : memref<1x64x108xbf16, #tpu.memory_space<vmem>>, vector<1x64x108xbf16>
    %6 = vector.shape_cast %5 : vector<1x64x108xbf16> to vector<64x108xbf16>
    %cst = arith.constant dense<0.000000e+00> : vector<128x64xf32>
    %7 = tpu.matmul %4, %6, %cst {dimension_numbers = #tpu.dot_dimension_numbers<[1], [1], [0], [0], [0, 0, 1, 0], [], []>} : vector<128x108xbf16>, vector<64x108xbf16>, vector<128x64xf32> -> vector<128x64xf32>
    %8 = arith.addf %3, %7 : vector<128x64xf32>
    %c0_7 = arith.constant 0 : index
    %c0_8 = arith.constant 0 : index
    %9 = vector.load %arg8[%c0_7, %c0_8] : memref<128x64xf32, #tpu.memory_space<vmem>>, vector<128x64xf32>
    tpu.vector_store %arg8[%c0_7, %c0_8], %8 {strides = array<i32>} : memref<128x64xf32, #tpu.memory_space<vmem>>, vector<128x64xf32>,
    %c0_i32_9 = arith.constant 0 : i32
    %10 = arith.cmpi eq, %arg3, %c0_i32_9 : i32
    %11 = arith.extui %10 : i1 to i32
    %c0_i32_10 = arith.constant 0 : i32
    %12 = arith.cmpi ne, %11, %c0_i32_10 : i32
    scf.if %12 {
      %c0_11 = arith.constant 0 : index
      %c0_12 = arith.constant 0 : index
      %13 = vector.load %arg8[%c0_11, %c0_12] : memref<128x64xf32, #tpu.memory_space<vmem>>, vector<128x64xf32>
      %c0_13 = arith.constant 0 : index
      %c0_14 = arith.constant 0 : index
      %14 = vector.load %arg6[%c0_13, %c0_14] : memref<128x1xf32, #tpu.memory_space<vmem>>, vector<128x1xf32>
      %15 = vector.broadcast %14 : vector<128x1xf32> to vector<128x64xf32>
      %16 = arith.addf %13, %15 : vector<128x64xf32>
      %c0_15 = arith.constant 0 : index
      %c0_16 = arith.constant 0 : index
      %c0_17 = arith.constant 0 : index
      %17 = vector.load %arg7[%c0_15, %c0_16, %c0_17] : memref<1x128x64xf32, #tpu.memory_space<vmem>>, vector<1x128x64xf32>
      %18 = vector.shape_cast %17 : vector<1x128x64xf32> to vector<128x64xf32>
      %19 = vector.shape_cast %16 : vector<128x64xf32> to vector<1x128x64xf32>
      tpu.vector_store %arg7[%c0_15, %c0_16, %c0_17], %19 {strides = array<i32>} : memref<1x128x64xf32, #tpu.memory_space<vmem>>, vector<1x128x64xf32>,
    } else {
    }
    return
  }
  func.func @transform_0(%arg0: i32, %arg1: i32, %arg2: i32, %arg3: i32) -> (i32, i32, i32) {
    %c0_i32 = arith.constant 0 : i32
    return %arg0, %arg1, %arg3 : i32, i32, i32
  }
  func.func @transform_1(%arg0: i32, %arg1: i32, %arg2: i32, %arg3: i32) -> (i32, i32) {
    %c0_i32 = arith.constant 0 : i32
    return %arg2, %arg3 : i32, i32
  }
  func.func @transform_2(%arg0: i32, %arg1: i32, %arg2: i32, %arg3: i32) -> (i32, i32) {
    %c0_i32 = arith.constant 0 : i32
    %c0_i32_0 = arith.constant 0 : i32
    return %arg2, %c0_i32 : i32, i32
  }
  func.func @transform_3(%arg0: i32, %arg1: i32, %arg2: i32, %arg3: i32) -> (i32, i32, i32) {
    %c0_i32 = arith.constant 0 : i32
    return %arg0, %arg2, %arg1 : i32, i32, i32
  }
}

</mosaic_0001>

<bundles_post_ra>
// kernel: _conv_downsample.1
= control target key start
LH: loop header
LB: loop body
LE: loop exit
PB: predicated region body
PF: predicated region fallthrough
CT: control target
= control target key end

     0   :  { %s995_s12 = smov 0   ;;  %s997_s13 = smov 0   ;;  %s1206_s0 = inlined_call_operand.vmem [shape: bf16[2,64,108], index: 0, kind: input, shape index: {}]   ;;  %s1207_s1 = inlined_call_operand.vmem [shape: bf16[128,108], index: 1, kind: input, shape index: {}]   ;;  %s1208_s2 = inlined_call_operand.vmem [shape: f32[128,1], index: 2, kind: input, shape index: {}]   ;;  %s1209_s3 = inlined_call_operand.vmem [shape: f32[2,128,64], index: 3, kind: output, shape index: {}]  }
   0x1   :  { %s999_s14 = smov 0  }
   0x2 LB: > { %s39_s15 = sadd.s32 1, %s967_s13  ;;  %p831_p0 = scmp.ge.s32.totalorder %s971_s14, 1  ;;  %s971_s14 = sphi %s999_s14, %s13_s14   ;;  %s967_s13 = sphi %s997_s13, %s1211_s13   ;;  %s963_s12 = sphi %s995_s12, %s1210_s12  }
   0x3   : > { %p41_p1 = scmp.ge.s32.totalorder %s39_s15, 2  ;;  %p206_p2 = scmp.lt.s32.totalorder %s971_s14, 3 }
   0x5   : > { %s1213_s15 = smov (%p41_p1, %s39_s15), 0  ;;  %p207_p3 = pnand %p831_p0, %p206_p2 }
   0x6   : > { %p258_p4 = scmp.lt.s32.totalorder (!%p207_p3), %s963_s12, 1 }
   0x7   : > { %210 = sbr.rel (%p207_p3) target bundleno = 222 (0xde), region = 32 }
   0xc   : > { %v558_v0 = vld [vmem:[%s1208_s2] sm:$0xff]  ;;  %v560_v1 = vld [vmem:[%s1208_s2 + $0x10] sm:$0xff]  ;;  %v973_v2 = vmov 0   ;;  %s1215_s12 = smov (!%p258_p4, %s963_s12), 1  ;;  %vm420_vm0 = vcmask 883712   ;;  %v559_v5 = vld [vmem:[%s1208_s2 + $0x8] sm:$0xff] }
   0xd   : > { %946 = vset.pattern.permute.xlu0 %v973_v2  ;;  %947 = vset.pattern.permute.xlu1 %v973_v2  ;;  %s894_s20 = sshll.u32 %s1215_s12, 5  ;;  %v561_v6 = vld [vmem:[%s1208_s2 + $0x18] sm:$0xff]  ;;  %v562_v7 = vld [vmem:[%s1208_s2 + $0x20] sm:$0xff]  ;;  %v564_v10 = vld [vmem:[%s1208_s2 + $0x30] sm:$0xff]  ;;  %vm303_vm1 = vcmask 523264   ;;  %v974_v33 = vmov 0.0  }
   0xe   : > { %576 = vperm.xlu0 %946, %v558_v0   ;;  %586 = vperm.xlu1 %947, %v560_v1   ;;  %s1025_s23 = scalar_lea.vmem %s1206_s0, %s894_s20  ;;  %v565_v11 = vld [vmem:[%s1208_s2 + $0x38] sm:$0xff]  ;;  %v567_v14 = vld [vmem:[%s1208_s2 + $0x48] sm:$0xff]  ;;  %v568_v15 = vld [vmem:[%s1208_s2 + $0x50] sm:$0xff]  ;;  %304 = vst.msk [vmem:[#allocation2] sm:$0xff] %vm303_vm1, %v974_v33  ;;  %s895_s22 = sshll.u32 %s1215_s12, 7 }
   0xf   : > { %948 = vset.pattern.permute.xlu2 %v973_v2  ;;  %v907_v3 = vld [vmem:[%s1025_s23 + $0x18] sm:$0xff]  ;;  %v906_v8 = vld [vmem:[%s1025_s23 + $0x10] sm:$0xff]  ;;  %v905_v12 = vld [vmem:[%s1025_s23 + $0x8] sm:$0xff]  ;;  %305 = vst.msk [vmem:[#allocation2 + $0x8] sm:$0xff] %vm303_vm1, %v974_v33  ;;  %s1141_s25 = scalar_lea.vmem %s1209_s3, %s895_s22 }
  0x10   : > { %v455_v4 = vsel %vm420_vm0, %v907_v3, 0  ;;  %596 = vperm.xlu2 %948, %v562_v7   ;;  %v452_v9 = vsel %vm420_vm0, %v906_v8, 0  ;;  %v449_v13 = vsel %vm420_vm0, %v905_v12, 0  ;;  %v563_v16 = vld [vmem:[%s1208_s2 + $0x28] sm:$0xff]  ;;  %v904_v17 = vld [vmem:[%s1025_s23] sm:$0xff]  ;;  %v898_v23 = vld [vmem:[%s1207_s1 + $0x10] sm:$0xff] }
  0x11   : > { %461 = vmatpush.bf16.xpose.msra.mxu0 %v455_v4  ;;  %908 = vmatpush.bf16.xpose.msra.mxu1 %v455_v4  ;;  %v446_v18 = vsel %vm420_vm0, %v904_v17, 0  ;;  %v570_v19 = vld [vmem:[%s1208_s2 + $0x60] sm:$0xff]  ;;  %v571_v20 = vld [vmem:[%s1208_s2 + $0x68] sm:$0xff]  ;;  %v902_v25 = vld [vmem:[%s1207_s1 + $0x30] sm:$0xff]  ;;  %306 = vst.msk [vmem:[#allocation2 + $0x10] sm:$0xff] %vm303_vm1, %v974_v33 }
  0x12   : > { %909 = vmatpush.bf16.xpose.msra.mxu2 %v455_v4  ;;  %910 = vmatpush.bf16.xpose.msra.mxu3 %v455_v4  ;;  %v566_v21 = vld [vmem:[%s1208_s2 + $0x40] sm:$0xff]  ;;  %v573_v26 = vld [vmem:[%s1208_s2 + $0x78] sm:$0xff]  ;;  %v572_v28 = vld [vmem:[%s1208_s2 + $0x70] sm:$0xff]  ;;  %307 = vst.msk [vmem:[#allocation2 + $0x18] sm:$0xff] %vm303_vm1, %v974_v33 }
  0x13   : > { %v896_v22 = vld [vmem:[%s1207_s1] sm:$0xff]  ;;  %v569_v27 = vld [vmem:[%s1208_s2 + $0x58] sm:$0xff]  ;;  %v897_v29 = vld [vmem:[%s1207_s1 + $0x8] sm:$0xff]  ;;  %308 = vst.msk [vmem:[#allocation2 + $0x20] sm:$0xff] %vm303_vm1, %v974_v33 }
  0x14   : > { %v900_v24 = vld [vmem:[%s1207_s1 + $0x20] sm:$0xff]  ;;  %v899_v30 = vld [vmem:[%s1207_s1 + $0x18] sm:$0xff]  ;;  %v901_v31 = vld [vmem:[%s1207_s1 + $0x28] sm:$0xff]  ;;  %309 = vst.msk [vmem:[#allocation2 + $0x28] sm:$0xff] %vm303_vm1, %v974_v33 }
  0x15   : > { %v903_v32 = vld [vmem:[%s1207_s1 + $0x38] sm:$0xff]  ;;  %310 = vst.msk [vmem:[#allocation2 + $0x30] sm:$0xff] %vm303_vm1, %v974_v33  ;;  %v320_v40 = vld [vmem:[#allocation2] sm:$0xff] }
  0x16   : > { %581 = vperm.xlu0 %946, %v559_v5   ;;  %591 = vperm.xlu1 %947, %v561_v6   ;;  %311 = vst.msk [vmem:[#allocation2 + $0x38] sm:$0xff] %vm303_vm1, %v974_v33  ;;  %v321_v51 = vld [vmem:[#allocation2 + $0x8] sm:$0xff] }
  0x17   : > { %312 = vst.msk [vmem:[#allocation2 + $0x40] sm:$0xff] %vm303_vm1, %v974_v33 }
  0x18   : > { %601 = vperm.xlu2 %948, %v563_v16   ;;  %313 = vst.msk [vmem:[#allocation2 + $0x48] sm:$0xff] %vm303_vm1, %v974_v33 }
  0x19   : > { %462 = vmatpush.bf16.xpose.msra.mxu0 %v452_v9  ;;  %911 = vmatpush.bf16.xpose.msra.mxu1 %v452_v9  ;;  %314 = vst.msk [vmem:[#allocation2 + $0x50] sm:$0xff] %vm303_vm1, %v974_v33 }
  0x1a   : > { %912 = vmatpush.bf16.xpose.msra.mxu2 %v452_v9  ;;  %913 = vmatpush.bf16.xpose.msra.mxu3 %v452_v9  ;;  %315 = vst.msk [vmem:[#allocation2 + $0x58] sm:$0xff] %vm303_vm1, %v974_v33  ;;  %v324_v41 = vld [vmem:[#allocation2 + $0x20] sm:$0xff]  ;;  %v322_v9 = vld [vmem:[#allocation2 + $0x10] sm:$0xff] }
  0x1b   : > { %316 = vst.msk [vmem:[#allocation2 + $0x60] sm:$0xff] %vm303_vm1, %v974_v33  ;;  %v325_v57 = vld [vmem:[#allocation2 + $0x28] sm:$0xff] }
  0x1c   : > { %317 = vst.msk [vmem:[#allocation2 + $0x68] sm:$0xff] %vm303_vm1, %v974_v33 }
  0x1d   : > { %318 = vst.msk [vmem:[#allocation2 + $0x70] sm:$0xff] %vm303_vm1, %v974_v33 }
  0x1e   : > { %606 = vperm.xlu0 %946, %v564_v10   ;;  %611 = vperm.xlu1 %947, %v565_v11   ;;  %319 = vst.msk [vmem:[#allocation2 + $0x78] sm:$0xff] %vm303_vm1, %v974_v33  ;;  %v328_v48 = vld [vmem:[#allocation2 + $0x40] sm:$0xff]  ;;  %v327_v33 = vld [vmem:[#allocation2 + $0x38] sm:$0xff] }
  0x1f   : > { %v329_v2 = vld [vmem:[#allocation2 + $0x48] sm:$0xff] }
  0x20   : > { %616 = vperm.xlu2 %948, %v566_v21  }
  0x21   : > { %463 = vmatpush.bf16.xpose.msra.mxu0 %v449_v13  ;;  %914 = vmatpush.bf16.xpose.msra.mxu1 %v449_v13 }
  0x22   : > { %915 = vmatpush.bf16.xpose.msra.mxu2 %v449_v13  ;;  %916 = vmatpush.bf16.xpose.msra.mxu3 %v449_v13  ;;  %v332_v49 = vld [vmem:[#allocation2 + $0x60] sm:$0xff]  ;;  %v326_v13 = vld [vmem:[#allocation2 + $0x30] sm:$0xff] }
  0x23   : > { %v333_v3 = vld [vmem:[#allocation2 + $0x68] sm:$0xff] }
  0x26   : > { %621 = vperm.xlu0 %946, %v567_v14   ;;  %626 = vperm.xlu1 %947, %v568_v15  }
  0x28   : > { %631 = vperm.xlu2 %948, %v569_v27  }
  0x29   : > { %464 = vmatpush.bf16.xpose.msra.mxu0 %v446_v18  ;;  %917 = vmatpush.bf16.xpose.msra.mxu1 %v446_v18 }
  0x2a   : > { %918 = vmatpush.bf16.xpose.msra.mxu2 %v446_v18  ;;  %919 = vmatpush.bf16.xpose.msra.mxu3 %v446_v18 }
  0x2e   : > { %636 = vperm.xlu0 %946, %v570_v19   ;;  %641 = vperm.xlu1 %947, %v571_v20  }
  0x30   : > { %884 = vmatmul.msk.bf16.vlgmr.msra.gmra.mxu0 %vm420_vm0, %v896_v22  ;;  %886 = vmatmul.msk.bf16.vlgmr.msra.gmra.mxu1 %vm420_vm0, %v898_v23  ;;  %v330_v22 = vld [vmem:[#allocation2 + $0x50] sm:$0xff] }
  0x31   : > { %888 = vmatmul.msk.bf16.vlgmr.msra.gmra.mxu2 %vm420_vm0, %v900_v24  ;;  %890 = vmatmul.msk.bf16.vlgmr.msra.gmra.mxu3 %vm420_vm0, %v902_v25  ;;  %v334_v23 = vld [vmem:[#allocation2 + $0x70] sm:$0xff] }
  0x32   : > { %646 = vperm.xlu2 %948, %v572_v28  }
  0x36   : > { %651 = vperm.xlu0 %946, %v573_v26  }
  0x40   : > { %885 = vmatmul.msk.bf16.gmra.mxu0 %vm420_vm0, %v897_v29  ;;  %887 = vmatmul.msk.bf16.gmra.mxu1 %vm420_vm0, %v899_v30  ;;  %v323_v29 = vld [vmem:[#allocation2 + $0x18] sm:$0xff] }
  0x41   : > { %889 = vmatmul.msk.bf16.gmra.mxu2 %vm420_vm0, %v901_v31  ;;  %891 = vmatmul.msk.bf16.gmra.mxu3 %vm420_vm0, %v903_v32 }
  0x6a   : > { %v597_v37 = vpop.permute.xlu2 %596 }
  0x72   : > { %v602_v46 = vpop.permute.xlu2 %601 }
  0x7a   : > { %v617_v0 = vpop.permute.xlu2 %616 }
  0x80   : > { %v577_v34 = vpop.permute.xlu0 %576  ;;  %v1125_v35 = vpop.permute.xlu1 %586 }
  0x82   : > { %v632_v24 = vpop.permute.xlu2 %631 }
  0x88   : > { %v582_v36 = vpop.permute.xlu0 %581  ;;  %v1127_v38 = vpop.permute.xlu1 %591 }
  0x90   : > { %v1129_v39 = vpop.permute.xlu0 %606  ;;  %v1132_v47 = vpop.permute.xlu1 %611 }
  0x98   : > { %v1135_v50 = vpop.permute.xlu0 %621  ;;  %v1148_v4 = vpop.permute.xlu1 %626 }
  0xa0   : > { %v637_v14 = vpop.permute.xlu0 %636 }
  0xad   : > { %v466_v42 = vpop.f32.mrf.mxu0  ;;  %v476_v43 = vpop.f32.mrf.mxu1 }
  0xae   : > { %v506_v44 = vadd.f32 %v466_v42, %v320_v40  ;;  %v510_v45 = vadd.f32 %v476_v43, %v324_v41 }
  0xb0   : > { %523 = vst.msk [vmem:[#allocation2] sm:$0xff] %vm303_vm1, %v506_v44 }
  0xb1   : > { %527 = vst.msk [vmem:[#allocation2 + $0x20] sm:$0xff] %vm303_vm1, %v510_v45  ;;  %v331_v45 = vld [vmem:[#allocation2 + $0x58] sm:$0xff] }
  0xb4   : > { %v486_v52 = vpop.f32.mrf.mxu2  ;;  %v496_v53 = vpop.f32.mrf.mxu3 }
  0xb5   : > { %v514_v54 = vadd.f32 %v486_v52, %v328_v48  ;;  %v518_v55 = vadd.f32 %v496_v53, %v332_v49  ;;  %v468_v56 = vpop.f32.mrf.mxu0  ;;  %v478_v58 = vpop.f32.mrf.mxu1 }
  0xb6   : > { %v507_v59 = vadd.f32 %v468_v56, %v321_v51  ;;  %v511_v63 = vadd.f32 %v478_v58, %v325_v57  ;;  %v335_v51 = vld [vmem:[#allocation2 + $0x78] sm:$0xff]  ;;  %v647_v56 = vpop.permute.xlu2 %646 }
  0xb7   : > { %v542_v60 = vld [vmem:[#allocation2] sm:$0xff]  ;;  %531 = vst.msk [vmem:[#allocation2 + $0x40] sm:$0xff] %vm303_vm1, %v514_v54 }
  0xb8   : > { %v654_v61 = vadd.f32 %v577_v34, %v542_v60  ;;  %v546_v62 = vld [vmem:[#allocation2 + $0x20] sm:$0xff]  ;;  %535 = vst.msk [vmem:[#allocation2 + $0x60] sm:$0xff] %vm303_vm1, %v518_v55 }
  0xb9   : > { %v658_v1 = vadd.f32 %v597_v37, %v546_v62  ;;  %524 = vst.msk [vmem:[#allocation2 + $0x8] sm:$0xff] %vm303_vm1, %v507_v59  ;;  %v642_v37 = vpop.permute.xlu1 %641 }
  0xba   : > { %670 = vst.msk [vmem:[%s1141_s25] sm:$0xff] %vm303_vm1, %v654_v61 }
  0xbb   : > { %674 = vst.msk [vmem:[%s1141_s25 + $0x20] sm:$0xff] %vm303_vm1, %v658_v1  ;;  %v652_v1 = vpop.permute.xlu0 %651 }
  0xbc   : > { %528 = vst.msk [vmem:[#allocation2 + $0x28] sm:$0xff] %vm303_vm1, %v511_v63  ;;  %v488_v5 = vpop.f32.mrf.mxu2  ;;  %v498_v6 = vpop.f32.mrf.mxu3 }
  0xbd   : > { %v515_v7 = vadd.f32 %v488_v5, %v329_v2  ;;  %v519_v8 = vadd.f32 %v498_v6, %v333_v3  ;;  %v471_v10 = vpop.f32.mrf.mxu0  ;;  %v481_v11 = vpop.f32.mrf.mxu1 }
  0xbe   : > { %v550_v12 = vld [vmem:[#allocation2 + $0x40] sm:$0xff]  ;;  %v508_v19 = vadd.f32 %v471_v10, %v322_v9  ;;  %v512_v21 = vadd.f32 %v481_v11, %v326_v13 }
  0xbf   : > { %v662_v15 = vadd.f32 %v617_v0, %v550_v12  ;;  %v554_v16 = vld [vmem:[#allocation2 + $0x60] sm:$0xff]  ;;  %532 = vst.msk [vmem:[#allocation2 + $0x48] sm:$0xff] %vm303_vm1, %v515_v7 }
  0xc0   : > { %v666_v17 = vadd.f32 %v637_v14, %v554_v16  ;;  %v543_v18 = vld [vmem:[#allocation2 + $0x8] sm:$0xff]  ;;  %536 = vst.msk [vmem:[#allocation2 + $0x68] sm:$0xff] %vm303_vm1, %v519_v8 }
  0xc1   : > { %678 = vst.msk [vmem:[%s1141_s25 + $0x40] sm:$0xff] %vm303_vm1, %v662_v15  ;;  %v655_v20 = vadd.f32 %v582_v36, %v543_v18 }
  0xc2   : > { %682 = vst.msk [vmem:[%s1141_s25 + $0x60] sm:$0xff] %vm303_vm1, %v666_v17 }
  0xc3   : > { %671 = vst.msk [vmem:[%s1141_s25 + $0x8] sm:$0xff] %vm303_vm1, %v655_v20  ;;  %v547_v25 = vld [vmem:[#allocation2 + $0x28] sm:$0xff] }
  0xc4   : > { %v659_v26 = vadd.f32 %v602_v46, %v547_v25  ;;  %525 = vst.msk [vmem:[#allocation2 + $0x10] sm:$0xff] %vm303_vm1, %v508_v19  ;;  %v491_v27 = vpop.f32.mrf.mxu2  ;;  %v501_v28 = vpop.f32.mrf.mxu3 }
  0xc5   : > { %529 = vst.msk [vmem:[#allocation2 + $0x30] sm:$0xff] %vm303_vm1, %v512_v21  ;;  %v516_v30 = vadd.f32 %v491_v27, %v330_v22  ;;  %v520_v31 = vadd.f32 %v501_v28, %v334_v23  ;;  %v473_v32 = vpop.f32.mrf.mxu0  ;;  %v483_v34 = vpop.f32.mrf.mxu1 }
  0xc6   : > { %675 = vst.msk [vmem:[%s1141_s25 + $0x28] sm:$0xff] %vm303_vm1, %v659_v26  ;;  %v551_v36 = vld [vmem:[#allocation2 + $0x48] sm:$0xff]  ;;  %v509_v42 = vadd.f32 %v473_v32, %v323_v29  ;;  %v513_v44 = vadd.f32 %v483_v34, %v327_v33 }
  0xc7   : > { %v663_v40 = vadd.f32 %v1135_v50, %v551_v36  ;;  %v555_v41 = vld [vmem:[#allocation2 + $0x68] sm:$0xff]  ;;  %533 = vst.msk [vmem:[#allocation2 + $0x50] sm:$0xff] %vm303_vm1, %v516_v30 }
  0xc8   : > { %v667_v43 = vadd.f32 %v642_v37, %v555_v41  ;;  %537 = vst.msk [vmem:[#allocation2 + $0x70] sm:$0xff] %vm303_vm1, %v520_v31 }
  0xc9   : > { %679 = vst.msk [vmem:[%s1141_s25 + $0x48] sm:$0xff] %vm303_vm1, %v663_v40 }
  0xca   : > { %683 = vst.msk [vmem:[%s1141_s25 + $0x68] sm:$0xff] %vm303_vm1, %v667_v43 }
  0xcb   : > { %v544_v46 = vld [vmem:[#allocation2 + $0x10] sm:$0xff]  ;;  %526 = vst.msk [vmem:[#allocation2 + $0x18] sm:$0xff] %vm303_vm1, %v509_v42 }
  0xcc   : > { %v656_v48 = vadd.f32 %v1125_v35, %v544_v46  ;;  %v548_v49 = vld [vmem:[#allocation2 + $0x30] sm:$0xff]  ;;  %530 = vst.msk [vmem:[#allocation2 + $0x38] sm:$0xff] %vm303_vm1, %v513_v44  ;;  %v493_v50 = vpop.f32.mrf.mxu2  ;;  %v503_v52 = vpop.f32.mrf.mxu3 }
  0xcd   : > { %v660_v53 = vadd.f32 %v1129_v39, %v548_v49  ;;  %v517_v54 = vadd.f32 %v493_v50, %v331_v45  ;;  %v521_v58 = vadd.f32 %v503_v52, %v335_v51 }
  0xce   : > { %672 = vst.msk [vmem:[%s1141_s25 + $0x10] sm:$0xff] %vm303_vm1, %v656_v48  ;;  %v552_v55 = vld [vmem:[#allocation2 + $0x50] sm:$0xff] }
  0xcf   : > { %676 = vst.msk [vmem:[%s1141_s25 + $0x30] sm:$0xff] %vm303_vm1, %v660_v53  ;;  %v664_v35 = vadd.f32 %v1148_v4, %v552_v55  ;;  %v556_v57 = vld [vmem:[#allocation2 + $0x70] sm:$0xff] }
  0xd0   : > { %v668_v59 = vadd.f32 %v647_v56, %v556_v57  ;;  %534 = vst.msk [vmem:[#allocation2 + $0x58] sm:$0xff] %vm303_vm1, %v517_v54 }
  0xd1   : > { %680 = vst.msk [vmem:[%s1141_s25 + $0x50] sm:$0xff] %vm303_vm1, %v664_v35 }
  0xd2   : > { %684 = vst.msk [vmem:[%s1141_s25 + $0x70] sm:$0xff] %vm303_vm1, %v668_v59  ;;  %v545_v39 = vld [vmem:[#allocation2 + $0x18] sm:$0xff] }
  0xd3   : > { %v657_v60 = vadd.f32 %v1127_v38, %v545_v39  ;;  %v549_v61 = vld [vmem:[#allocation2 + $0x38] sm:$0xff]  ;;  %538 = vst.msk [vmem:[#allocation2 + $0x78] sm:$0xff] %vm303_vm1, %v521_v58 }
  0xd4   : > { %v661_v62 = vadd.f32 %v1132_v47, %v549_v61 }
  0xd5   : > { %673 = vst.msk [vmem:[%s1141_s25 + $0x18] sm:$0xff] %vm303_vm1, %v657_v60 }
  0xd6   : > { %677 = vst.msk [vmem:[%s1141_s25 + $0x38] sm:$0xff] %vm303_vm1, %v661_v62 }
  0xd7   : > { %v553_v63 = vld [vmem:[#allocation2 + $0x58] sm:$0xff] }
  0xd8   : > { %v665_v0 = vadd.f32 %v632_v24, %v553_v63 }
  0xda   : > { %681 = vst.msk [vmem:[%s1141_s25 + $0x58] sm:$0xff] %vm303_vm1, %v665_v0  ;;  %v557_v2 = vld [vmem:[#allocation2 + $0x78] sm:$0xff] }
  0xdb   : > { %v669_v3 = vadd.f32 %v652_v1, %v557_v2 }
  0xdd   : > { %685 = vst.msk [vmem:[%s1141_s25 + $0x78] sm:$0xff] %vm303_vm1, %v669_v3 }
  0xde PF: > { %s13_s14 = sadd.s32 1, %s971_s14   ;;  %s1210_s12 = smov %s967_s13 }
  0xdf   : > { %p10_p5 = scmp.ge.s32.totalorder %s13_s14, 4   ;;  %s1211_s13 = smov %s1213_s15 }
  0xe1   :  { %12 = sbr.rel (!%p10_p5) target bundleno = 2 (0x2), region = 76 }

</bundles_post_ra>
